<compile_context>
chip_gen: v7x
topology: tpu7x:2x2x1
jax: 0.10.0
libtpu: 0.0.40
codegen_flags: <defaults>
</compile_context>

<pallas_src>
import functools

import jax
import jax.numpy as jnp
from jax.experimental import pallas as pl
from jax.experimental.pallas import tpu as pltpu


def _round_up(x, m):
    return (x + m - 1) // m * m


def _vmem_estimate_bytes(t, dp, kv_itemsize, out_itemsize):
    streamed = 2 * (2 * t * dp * kv_itemsize)   # q + kv tiles, double-buffered
    out = 2 * t * dp * out_itemsize             # output tile, double-buffered
    scratch = (t * dp + 2 * t) * 4              # f32 m / l / acc scratch
    return streamed + out + scratch


def _flash_attn_kernel(q_ref, kv_ref, o_ref, m_sc, l_sc, acc_sc, *,
                       n_mem_kb, mlen_p, pad_front, seq_tile, kv_dtype,
                       approx_recip):
    qi = pl.program_id(1)
    ki = pl.program_id(2)
    t = seq_tile
    diag = qi + n_mem_kb            # k-block index of the diagonal (causal) block

    @pl.when(ki == 0)
    def _init():
        m_sc[...] = jnp.full_like(m_sc, -jnp.inf)
        l_sc[...] = jnp.zeros_like(l_sc)
        acc_sc[...] = jnp.zeros_like(acc_sc)

    # Blocks strictly past the diagonal contribute nothing (fully masked): skip
    # their matmuls / exp / mask work entirely.  Their kv DMA is elided because
    # the kv index_map is clamped to the diagonal block.
    compute = ki <= diag
    # Masking is only needed on the diagonal block (causal) and, if mems were
    # front-padded to a tile multiple, on block 0 (zero padding rows).
    needs_mask = ki == diag
    if pad_front > 0:
        needs_mask = needs_mask | (ki == 0)

    def _body(apply_mask):
        q = q_ref[0]                                           # (t, dp)
        kv = kv_ref[0]                                         # (t, dp)
        # scores on the MXU, f32 accumulation: (t, t)
        s = jnp.einsum("qd,kd->qk", q, kv, preferred_element_type=jnp.float32)
        if apply_mask:
            # padded-concat coords: key kp masked iff kp > q + mlen_p (causal,
            # which also covers the h tail padding) or kp < pad_front (mems
            # front padding, only possible in block 0).
            row = jax.lax.broadcasted_iota(jnp.int32, (t, 1), 0) + (qi * t + mlen_p)
            col = jax.lax.broadcasted_iota(jnp.int32, (1, t), 1) + ki * t
            masked = col > row
            if pad_front > 0:
                masked = masked | (col < pad_front)
            s = jnp.where(masked, jnp.float32(-1000000.0), s)
        # online softmax update (all stats in f32)
        m_prev = m_sc[...]
        m_new = jnp.maximum(m_prev, jnp.max(s, axis=-1, keepdims=True))
        alpha = jnp.exp(m_prev - m_new)
        p = jnp.exp(s - m_new)
        l_sc[...] = alpha * l_sc[...] + jnp.sum(p, axis=-1, keepdims=True)
        acc_sc[...] = alpha * acc_sc[...] + jnp.dot(
            p.astype(kv_dtype), kv, preferred_element_type=jnp.float32)
        m_sc[...] = m_new

    @pl.when(compute & needs_mask)
    def _masked():
        _body(True)

    @pl.when(compute & jnp.logical_not(needs_mask))
    def _unmasked():
        _body(False)

    @pl.when(ki == pl.num_programs(2) - 1)
    def _finalize():
        # single deferred normalization per (batch, q-block) tile
        inv = pl.reciprocal(l_sc[...], approx=approx_recip)
        o_ref[0] = (acc_sc[...] * inv).astype(o_ref.dtype)


def attention_pallas(h, mems=None, *, seq_tile=None, bf16_matmul=True):
    """h: [qlen, B, D], mems: optional [mlen, B, D] -> [qlen, B, D]."""
    qlen, bsz, d = h.shape
    mlen = mems.shape[0] if mems is not None else 0
    has_mems = mlen > 0

    out_dtype = h.dtype
    if bf16_matmul and h.dtype == jnp.float32:
        compute_dtype = jnp.bfloat16          # bf16 MXU operands, f32 accumulation
    else:
        compute_dtype = h.dtype
    approx_recip = compute_dtype == jnp.bfloat16
    kv_isz = jnp.dtype(compute_dtype).itemsize
    out_isz = jnp.dtype(out_dtype).itemsize

    # lane dim padded to a multiple of 128 for unmasked full-lane vld/vst
    dp = _round_up(d, 128)

    # seq tile (multiple of 8): 256 matches the v6e/v7x MXU, 128 on v5e / when
    # the untiled D would blow VMEM (v7x 64 MiB) / when (B, n_qb) would leave a
    # v7x TensorCore idle.
    if seq_tile is None:
        t = 256
        kind = ""
        try:
            kind = jax.devices()[0].device_kind.lower()
        except Exception:
            pass
        if "v5" in kind:
            t = 128
        if bsz == 1 and qlen <= 256:
            t = 128
        if _vmem_estimate_bytes(t, dp, kv_isz, out_isz) > (24 << 20):
            t = 128
    else:
        t = int(seq_tile)
    t = max(8, min(_round_up(t, 8), _round_up(max(qlen, 1), 8)))

    qlen_p = _round_up(qlen, t)
    mlen_p = _round_up(mlen, t) if has_mems else 0
    pad_front = mlen_p - mlen
    n_mem_kb = mlen_p // t
    n_qb = qlen_p // t
    n_kb = n_mem_kb + n_qb

    # Build the single kv buffer [B, mlen_p + qlen_p, dp]:
    #   [front zeros | mems | h | tail zeros], dtype cast fused with transpose/pad.
    # TODO(synk): upstream producer could emit [B, seq, D] (D % 128 == 0)
    # directly to avoid this wrapper-side transpose/pad HBM pass.
    def to_bsd(x):
        return jnp.transpose(x, (1, 0, 2)).astype(compute_dtype)

    parts = []
    if has_mems:
        if pad_front:
            parts.append(jnp.zeros((bsz, pad_front, d), compute_dtype))
        parts.append(to_bsd(mems))
    parts.append(to_bsd(h))
    kv = parts[0] if len(parts) == 1 else jnp.concatenate(parts, axis=1)
    tail = (mlen_p + qlen_p) - kv.shape[1]
    if tail or dp != d:
        kv = jnp.pad(kv, ((0, 0), (0, tail), (0, dp - d)))

    # q tiles come from the h region of the same buffer (block n_mem_kb + qi);
    # kv block index is clamped to the diagonal so skipped iterations repeat the
    # previous block and their DMA is elided.
    q_spec = pl.BlockSpec((1, t, dp), lambda b, qi, ki: (b, n_mem_kb + qi, 0))
    kv_spec = pl.BlockSpec(
        (1, t, dp), lambda b, qi, ki: (b, jnp.minimum(ki, qi + n_mem_kb), 0))
    out_spec = pl.BlockSpec((1, t, dp), lambda b, qi, ki: (b, qi, 0))

    kernel = functools.partial(
        _flash_attn_kernel, n_mem_kb=n_mem_kb, mlen_p=mlen_p,
        pad_front=pad_front, seq_tile=t, kv_dtype=compute_dtype,
        approx_recip=approx_recip)

    vmem_limit = int(min(
        max(_vmem_estimate_bytes(t, dp, kv_isz, out_isz) * 1.5 + (8 << 20),
            32 << 20),
        64 << 20))

    out_b = pl.pallas_call(
        kernel,
        out_shape=jax.ShapeDtypeStruct((bsz, qlen_p, dp), out_dtype),
        grid_spec=pltpu.PrefetchScalarGridSpec(
            num_scalar_prefetch=0,
            grid=(bsz, n_qb, n_kb),
            in_specs=[q_spec, kv_spec],
            out_specs=out_spec,
            scratch_shapes=[
                pltpu.VMEM((t, 1), jnp.float32),    # running max
                pltpu.VMEM((t, 1), jnp.float32),    # running sum
                pltpu.VMEM((t, dp), jnp.float32),   # output accumulator
            ],
        ),
        compiler_params=pltpu.CompilerParams(
            dimension_semantics=("parallel", "parallel", "arbitrary"),
            vmem_limit_bytes=vmem_limit),
    )(kv, kv)

    # strip padding, back to PyTorch layout [qlen, B, D]
    return jnp.transpose(out_b[:, :qlen, :d], (1, 0, 2))


def attention_ref(h, mems=None):
    """Pure-JAX reference mirroring the PyTorch forward exactly."""
    if mems is not None:
        c = jnp.concatenate([mems, h], axis=0)
        mlen = mems.shape[0]
    else:
        c = h
        mlen = 0
    qlen = h.shape[0]
    klen = c.shape[0]
    score = jnp.einsum("qbd,kbd->qkb", h, c)
    rows = jnp.arange(qlen)[:, None]
    cols = jnp.arange(klen)[None, :]
    mask = (cols > rows + mlen)[:, :, None]
    score = jnp.where(mask, -1000000.0, score)
    prob = jax.nn.softmax(score, axis=1)
    return jnp.einsum("qkb,kbd->qbd", prob, c)


if __name__ == "__main__":
    key = jax.random.PRNGKey(0)
    k_h, k_m = jax.random.split(key)

    qlen, mlen, bsz, d = 8, 8, 2, 32
    h = jax.random.normal(k_h, (qlen, bsz, d), dtype=jnp.float32)
    mems = jax.random.normal(k_m, (mlen, bsz, d), dtype=jnp.float32)
    ref = attention_ref(h, mems)

    # exact f32 MXU path
    out = jax.block_until_ready(attention_pallas(h, mems, bf16_matmul=False))
    assert out.shape == (qlen, bsz, d)
    assert jnp.allclose(out, ref, atol=1e-5, rtol=1e-5)

    # default perf path (bf16 MXU operands, f32 softmax stats)
    out_fast = jax.block_until_ready(attention_pallas(h, mems))
    assert jnp.allclose(out_fast, ref, atol=5e-2, rtol=5e-2)

    # without mems (mlen = 0 path)
    out0 = jax.block_until_ready(attention_pallas(h, None, bf16_matmul=False))
    assert jnp.allclose(out0, attention_ref(h, None), atol=1e-5, rtol=1e-5)

    # multi-block path: mlen not a multiple of the tile -> exercises front-pad
    # masking, diagonal-only causal masking and fully-masked-block skipping
    qlen2, mlen2, d2 = 24, 11, 48
    h2 = jax.random.normal(k_h, (qlen2, bsz, d2), dtype=jnp.float32)
    m2 = jax.random.normal(k_m, (mlen2, bsz, d2), dtype=jnp.float32)
    out2 = jax.block_until_ready(
        attention_pallas(h2, m2, seq_tile=8, bf16_matmul=False))
    assert jnp.allclose(out2, attention_ref(h2, m2), atol=1e-5, rtol=1e-5)

    # bf16 inputs (bf16 MXU path, softmax stays f32 in-kernel)
    outb = jax.block_until_ready(
        attention_pallas(h.astype(jnp.bfloat16), mems.astype(jnp.bfloat16)))
    assert outb.shape == (qlen, bsz, d)
    assert jnp.allclose(outb.astype(jnp.float32), ref, atol=1e-1, rtol=1e-1)

    print("KERNEL_OK")
</pallas_src>

<mosaic_0001>
module attributes {stable_mosaic.version = 11 : i64} {
  func.func @_flash_attn_kernel(%arg0: i32, %arg1: i32, %arg2: i32, %arg3: memref<1x8x128xf32, #tpu.memory_space<vmem>>, %arg4: memref<1x8x128xf32, #tpu.memory_space<vmem>>, %arg5: memref<1x8x128xf32, #tpu.memory_space<vmem>>, %arg6: memref<8x1xf32, #tpu.memory_space<vmem>>, %arg7: memref<8x1xf32, #tpu.memory_space<vmem>>, %arg8: memref<8x128xf32, #tpu.memory_space<vmem>>) attributes {dimension_semantics = [#tpu.dimension_semantics<parallel>, #tpu.dimension_semantics<parallel>, #tpu.dimension_semantics<arbitrary>], iteration_bounds = array<i64: 2, 1, 2>, scalar_prefetch = 0 : i64, scratch_operands = 3 : i64, tpu.core_type = #tpu.core_type<tc>, window_params = [{transform_indices = @transform_0, window_bounds = array<i64: 1, 8, 128>}, {transform_indices = @transform_1, window_bounds = array<i64: 1, 8, 128>}, {transform_indices = @transform_2, window_bounds = array<i64: 1, 8, 128>}]} {
    %c1_i32 = arith.constant 1 : i32
    %0 = arith.addi %arg1, %c1_i32 : i32
    %c0_i32 = arith.constant 0 : i32
    %1 = arith.cmpi eq, %arg2, %c0_i32 : i32
    %2 = arith.extui %1 : i1 to i32
    %c0_i32_0 = arith.constant 0 : i32
    %3 = arith.cmpi ne, %2, %c0_i32_0 : i32
    scf.if %3 {
      %cst = arith.constant 0xFF800000 : f32
      %16 = vector.broadcast %cst : f32 to vector<8x1xf32>
      %c0 = arith.constant 0 : index
      %c0_5 = arith.constant 0 : index
      %17 = vector.load %arg6[%c0, %c0_5] : memref<8x1xf32, #tpu.memory_space<vmem>>, vector<8x1xf32>
      tpu.vector_store %arg6[%c0, %c0_5], %16 {strides = array<i32>} : memref<8x1xf32, #tpu.memory_space<vmem>>, vector<8x1xf32>,
      %cst_6 = arith.constant 0.000000e+00 : f32
      %18 = vector.broadcast %cst_6 : f32 to vector<8x1xf32>
      %c0_7 = arith.constant 0 : index
      %c0_8 = arith.constant 0 : index
      %19 = vector.load %arg7[%c0_7, %c0_8] : memref<8x1xf32, #tpu.memory_space<vmem>>, vector<8x1xf32>
      tpu.vector_store %arg7[%c0_7, %c0_8], %18 {strides = array<i32>} : memref<8x1xf32, #tpu.memory_space<vmem>>, vector<8x1xf32>,
      %cst_9 = arith.constant 0.000000e+00 : f32
      %20 = vector.broadcast %cst_9 : f32 to vector<8x128xf32>
      %c0_10 = arith.constant 0 : index
      %c0_11 = arith.constant 0 : index
      %21 = vector.load %arg8[%c0_10, %c0_11] : memref<8x128xf32, #tpu.memory_space<vmem>>, vector<8x128xf32>
      tpu.vector_store %arg8[%c0_10, %c0_11], %20 {strides = array<i32>} : memref<8x128xf32, #tpu.memory_space<vmem>>, vector<8x128xf32>,
    } else {
    }
    %4 = arith.cmpi sle, %arg2, %0 : i32
    %5 = arith.cmpi eq, %arg2, %0 : i32
    %6 = arith.andi %4, %5 : i1
    %7 = arith.extui %6 : i1 to i32
    %c0_i32_1 = arith.constant 0 : i32
    %8 = arith.cmpi ne, %7, %c0_i32_1 : i32
    scf.if %8 {
      %c0 = arith.constant 0 : index
      %c0_5 = arith.constant 0 : index
      %c0_6 = arith.constant 0 : index
      %16 = vector.load %arg3[%c0, %c0_5, %c0_6] : memref<1x8x128xf32, #tpu.memory_space<vmem>>, vector<1x8x128xf32>
      %17 = vector.shape_cast %16 : vector<1x8x128xf32> to vector<8x128xf32>
      %c0_7 = arith.constant 0 : index
      %c0_8 = arith.constant 0 : index
      %c0_9 = arith.constant 0 : index
      %18 = vector.load %arg4[%c0_7, %c0_8, %c0_9] : memref<1x8x128xf32, #tpu.memory_space<vmem>>, vector<1x8x128xf32>
      %19 = vector.shape_cast %18 : vector<1x8x128xf32> to vector<8x128xf32>
      "tpu.trace_start"() <{level = 10 : i32, message = "qd,kd->qk"}> : () -> ()
      %cst = arith.constant dense<0.000000e+00> : vector<8x8xf32>
      %20 = tpu.matmul %17, %19, %cst {dimension_numbers = #tpu.dot_dimension_numbers<[1], [1], [0], [0], [0, 0, 1, 0], [], []>} : vector<8x128xf32>, vector<8x128xf32>, vector<8x8xf32> -> vector<8x8xf32>
      "tpu.trace_stop"() : () -> ()
      %21 = tpu.iota {dimensions = array<i32: 0>} : vector<8x1xi32>
      %c8_i32 = arith.constant 8 : i32
      %22 = arith.muli %arg1, %c8_i32 : i32
      %c8_i32_10 = arith.constant 8 : i32
      %23 = arith.addi %22, %c8_i32_10 : i32
      %24 = vector.broadcast %23 : i32 to vector<8x1xi32>
      %25 = arith.addi %21, %24 : vector<8x1xi32>
      %26 = tpu.iota {dimensions = array<i32: 1>} : vector<1x8xi32>
      %c8_i32_11 = arith.constant 8 : i32
      %27 = arith.muli %arg2, %c8_i32_11 : i32
      %28 = vector.broadcast %27 : i32 to vector<1x8xi32>
      %29 = arith.addi %26, %28 : vector<1x8xi32>
      %30 = vector.broadcast %29 : vector<1x8xi32> to vector<8x8xi32>
      %31 = vector.broadcast %25 : vector<8x1xi32> to vector<8x8xi32>
      %32 = arith.cmpi sgt, %30, %31 : vector<8x8xi32>
      %cst_12 = arith.constant -1.000000e+06 : f32
      %33 = vector.broadcast %cst_12 : f32 to vector<8x8xf32>
      %34 = arith.select %32, %33, %20 : vector<8x8xi1>, vector<8x8xf32>
      %c0_13 = arith.constant 0 : index
      %c0_14 = arith.constant 0 : index
      %35 = vector.load %arg6[%c0_13, %c0_14] : memref<8x1xf32, #tpu.memory_space<vmem>>, vector<8x1xf32>
      %cst_15 = arith.constant dense<0xFF800000> : vector<8xf32>
      %36 = vector.multi_reduction <maximumf>, %34, %cst_15 [1] : vector<8x8xf32> to vector<8xf32>
      %37 = vector.shape_cast %36 : vector<8xf32> to vector<8x1xf32>
      %38 = arith.maximumf %35, %37 : vector<8x1xf32>
      %39 = arith.subf %35, %38 : vector<8x1xf32>
      %40 = math.exp %39 : vector<8x1xf32>
      %41 = vector.broadcast %38 : vector<8x1xf32> to vector<8x8xf32>
      %42 = arith.subf %34, %41 : vector<8x8xf32>
      %43 = math.exp %42 : vector<8x8xf32>
      %c0_16 = arith.constant 0 : index
      %c0_17 = arith.constant 0 : index
      %44 = vector.load %arg7[%c0_16, %c0_17] : memref<8x1xf32, #tpu.memory_space<vmem>>, vector<8x1xf32>
      %45 = arith.mulf %40, %44 : vector<8x1xf32>
      %cst_18 = arith.constant dense<0.000000e+00> : vector<8xf32>
      %46 = vector.multi_reduction <add>, %43, %cst_18 [1] : vector<8x8xf32> to vector<8xf32>
      %47 = vector.shape_cast %46 : vector<8xf32> to vector<8x1xf32>
      %48 = arith.addf %45, %47 : vector<8x1xf32>
      %c0_19 = arith.constant 0 : index
      %c0_20 = arith.constant 0 : index
      %49 = vector.load %arg7[%c0_19, %c0_20] : memref<8x1xf32, #tpu.memory_space<vmem>>, vector<8x1xf32>
      tpu.vector_store %arg7[%c0_19, %c0_20], %48 {strides = array<i32>} : memref<8x1xf32, #tpu.memory_space<vmem>>, vector<8x1xf32>,
      %c0_21 = arith.constant 0 : index
      %c0_22 = arith.constant 0 : index
      %50 = vector.load %arg8[%c0_21, %c0_22] : memref<8x128xf32, #tpu.memory_space<vmem>>, vector<8x128xf32>
      %51 = vector.broadcast %40 : vector<8x1xf32> to vector<8x128xf32>
      %52 = arith.mulf %51, %50 : vector<8x128xf32>
      %cst_23 = arith.constant dense<0.000000e+00> : vector<8x128xf32>
      %53 = tpu.matmul %43, %19, %cst_23 {dimension_numbers = #tpu.dot_dimension_numbers<[1], [0], [0], [1], [0, 0, 1, 1], [], []>} : vector<8x8xf32>, vector<8x128xf32>, vector<8x128xf32> -> vector<8x128xf32>
      %54 = arith.addf %52, %53 : vector<8x128xf32>
      %c0_24 = arith.constant 0 : index
      %c0_25 = arith.constant 0 : index
      %55 = vector.load %arg8[%c0_24, %c0_25] : memref<8x128xf32, #tpu.memory_space<vmem>>, vector<8x128xf32>
      tpu.vector_store %arg8[%c0_24, %c0_25], %54 {strides = array<i32>} : memref<8x128xf32, #tpu.memory_space<vmem>>, vector<8x128xf32>,
      %c0_26 = arith.constant 0 : index
      %c0_27 = arith.constant 0 : index
      %56 = vector.load %arg6[%c0_26, %c0_27] : memref<8x1xf32, #tpu.memory_space<vmem>>, vector<8x1xf32>
      tpu.vector_store %arg6[%c0_26, %c0_27], %38 {strides = array<i32>} : memref<8x1xf32, #tpu.memory_space<vmem>>, vector<8x1xf32>,
    } else {
    }
    %true = arith.constant true
    %9 = arith.xori %5, %true : i1
    %10 = arith.andi %4, %9 : i1
    %11 = arith.extui %10 : i1 to i32
    %c0_i32_2 = arith.constant 0 : i32
    %12 = arith.cmpi ne, %11, %c0_i32_2 : i32
    scf.if %12 {
      %c0 = arith.constant 0 : index
      %c0_5 = arith.constant 0 : index
      %c0_6 = arith.constant 0 : index
      %16 = vector.load %arg3[%c0, %c0_5, %c0_6] : memref<1x8x128xf32, #tpu.memory_space<vmem>>, vector<1x8x128xf32>
      %17 = vector.shape_cast %16 : vector<1x8x128xf32> to vector<8x128xf32>
      %c0_7 = arith.constant 0 : index
      %c0_8 = arith.constant 0 : index
      %c0_9 = arith.constant 0 : index
      %18 = vector.load %arg4[%c0_7, %c0_8, %c0_9] : memref<1x8x128xf32, #tpu.memory_space<vmem>>, vector<1x8x128xf32>
      %19 = vector.shape_cast %18 : vector<1x8x128xf32> to vector<8x128xf32>
      "tpu.trace_start"() <{level = 10 : i32, message = "qd,kd->qk"}> : () -> ()
      %cst = arith.constant dense<0.000000e+00> : vector<8x8xf32>
      %20 = tpu.matmul %17, %19, %cst {dimension_numbers = #tpu.dot_dimension_numbers<[1], [1], [0], [0], [0, 0, 1, 0], [], []>} : vector<8x128xf32>, vector<8x128xf32>, vector<8x8xf32> -> vector<8x8xf32>
      "tpu.trace_stop"() : () -> ()
      %c0_10 = arith.constant 0 : index
      %c0_11 = arith.constant 0 : index
      %21 = vector.load %arg6[%c0_10, %c0_11] : memref<8x1xf32, #tpu.memory_space<vmem>>, vector<8x1xf32>
      %cst_12 = arith.constant dense<0xFF800000> : vector<8xf32>
      %22 = vector.multi_reduction <maximumf>, %20, %cst_12 [1] : vector<8x8xf32> to vector<8xf32>
      %23 = vector.shape_cast %22 : vector<8xf32> to vector<8x1xf32>
      %24 = arith.maximumf %21, %23 : vector<8x1xf32>
      %25 = arith.subf %21, %24 : vector<8x1xf32>
      %26 = math.exp %25 : vector<8x1xf32>
      %27 = vector.broadcast %24 : vector<8x1xf32> to vector<8x8xf32>
      %28 = arith.subf %20, %27 : vector<8x8xf32>
      %29 = math.exp %28 : vector<8x8xf32>
      %c0_13 = arith.constant 0 : index
      %c0_14 = arith.constant 0 : index
      %30 = vector.load %arg7[%c0_13, %c0_14] : memref<8x1xf32, #tpu.memory_space<vmem>>, vector<8x1xf32>
      %31 = arith.mulf %26, %30 : vector<8x1xf32>
      %cst_15 = arith.constant dense<0.000000e+00> : vector<8xf32>
      %32 = vector.multi_reduction <add>, %29, %cst_15 [1] : vector<8x8xf32> to vector<8xf32>
      %33 = vector.shape_cast %32 : vector<8xf32> to vector<8x1xf32>
      %34 = arith.addf %31, %33 : vector<8x1xf32>
      %c0_16 = arith.constant 0 : index
      %c0_17 = arith.constant 0 : index
      %35 = vector.load %arg7[%c0_16, %c0_17] : memref<8x1xf32, #tpu.memory_space<vmem>>, vector<8x1xf32>
      tpu.vector_store %arg7[%c0_16, %c0_17], %34 {strides = array<i32>} : memref<8x1xf32, #tpu.memory_space<vmem>>, vector<8x1xf32>,
      %c0_18 = arith.constant 0 : index
      %c0_19 = arith.constant 0 : index
      %36 = vector.load %arg8[%c0_18, %c0_19] : memref<8x128xf32, #tpu.memory_space<vmem>>, vector<8x128xf32>
      %37 = vector.broadcast %26 : vector<8x1xf32> to vector<8x128xf32>
      %38 = arith.mulf %37, %36 : vector<8x128xf32>
      %cst_20 = arith.constant dense<0.000000e+00> : vector<8x128xf32>
      %39 = tpu.matmul %29, %19, %cst_20 {dimension_numbers = #tpu.dot_dimension_numbers<[1], [0], [0], [1], [0, 0, 1, 1], [], []>} : vector<8x8xf32>, vector<8x128xf32>, vector<8x128xf32> -> vector<8x128xf32>
      %40 = arith.addf %38, %39 : vector<8x128xf32>
      %c0_21 = arith.constant 0 : index
      %c0_22 = arith.constant 0 : index
      %41 = vector.load %arg8[%c0_21, %c0_22] : memref<8x128xf32, #tpu.memory_space<vmem>>, vector<8x128xf32>
      tpu.vector_store %arg8[%c0_21, %c0_22], %40 {strides = array<i32>} : memref<8x128xf32, #tpu.memory_space<vmem>>, vector<8x128xf32>,
      %c0_23 = arith.constant 0 : index
      %c0_24 = arith.constant 0 : index
      %42 = vector.load %arg6[%c0_23, %c0_24] : memref<8x1xf32, #tpu.memory_space<vmem>>, vector<8x1xf32>
      tpu.vector_store %arg6[%c0_23, %c0_24], %24 {strides = array<i32>} : memref<8x1xf32, #tpu.memory_space<vmem>>, vector<8x1xf32>,
    } else {
    }
    %c1_i32_3 = arith.constant 1 : i32
    %13 = arith.cmpi eq, %arg2, %c1_i32_3 : i32
    %14 = arith.extui %13 : i1 to i32
    %c0_i32_4 = arith.constant 0 : i32
    %15 = arith.cmpi ne, %14, %c0_i32_4 : i32
    scf.if %15 {
      %c0 = arith.constant 0 : index
      %c0_5 = arith.constant 0 : index
      %16 = vector.load %arg7[%c0, %c0_5] : memref<8x1xf32, #tpu.memory_space<vmem>>, vector<8x1xf32>
      %17 = tpu.reciprocal %16 : vector<8x1xf32> -> vector<8x1xf32>
      %c0_6 = arith.constant 0 : index
      %c0_7 = arith.constant 0 : index
      %18 = vector.load %arg8[%c0_6, %c0_7] : memref<8x128xf32, #tpu.memory_space<vmem>>, vector<8x128xf32>
      %19 = vector.broadcast %17 : vector<8x1xf32> to vector<8x128xf32>
      %20 = arith.mulf %18, %19 : vector<8x128xf32>
      %c0_8 = arith.constant 0 : index
      %c0_9 = arith.constant 0 : index
      %c0_10 = arith.constant 0 : index
      %21 = vector.load %arg5[%c0_8, %c0_9, %c0_10] : memref<1x8x128xf32, #tpu.memory_space<vmem>>, vector<1x8x128xf32>
      %22 = vector.shape_cast %21 : vector<1x8x128xf32> to vector<8x128xf32>
      %23 = vector.shape_cast %20 : vector<8x128xf32> to vector<1x8x128xf32>
      tpu.vector_store %arg5[%c0_8, %c0_9, %c0_10], %23 {strides = array<i32>} : memref<1x8x128xf32, #tpu.memory_space<vmem>>, vector<1x8x128xf32>,
    } else {
    }
    return
  }
  func.func @transform_0(%arg0: i32, %arg1: i32, %arg2: i32) -> (i32, i32, i32) {
    %c1_i32 = arith.constant 1 : i32
    %0 = arith.addi %c1_i32, %arg1 : i32
    %c0_i32 = arith.constant 0 : i32
    %c0_i32_0 = arith.constant 0 : i32
    return %arg0, %0, %c0_i32 : i32, i32, i32
  }
  func.func @transform_1(%arg0: i32, %arg1: i32, %arg2: i32) -> (i32, i32, i32) {
    %c1_i32 = arith.constant 1 : i32
    %0 = arith.addi %arg1, %c1_i32 : i32
    %1 = arith.minsi %arg2, %0 : i32
    %c0_i32 = arith.constant 0 : i32
    %c0_i32_0 = arith.constant 0 : i32
    return %arg0, %1, %c0_i32 : i32, i32, i32
  }
  func.func @transform_2(%arg0: i32, %arg1: i32, %arg2: i32) -> (i32, i32, i32) {
    %c0_i32 = arith.constant 0 : i32
    %c0_i32_0 = arith.constant 0 : i32
    return %arg0, %arg1, %c0_i32 : i32, i32, i32
  }
}

</mosaic_0001>

<bundles_post_ra>
// kernel: tpu_custom_call.1
= control target key start
LH: loop header
LB: loop body
LE: loop exit
PB: predicated region body
PF: predicated region fallthrough
CT: control target
= control target key end

     0   :  { %s1509_s0 = inlined_call_operand.hbm [shape: f32[2,16,128], index: 0, kind: input, shape index: {}]   ;;  %s1510_s1 = inlined_call_operand.hbm [shape: f32[2,16,128], index: 1, kind: input, shape index: {}]   ;;  %s1511_s2 = inlined_call_operand.hbm [shape: f32[2,8,128], index: 2, kind: output, shape index: {}]  }
   0x1   :  { %1523 = sst [smem:[#allocation19_spill]] %s1509_s0 }
   0x2   :  { %1524 = sst [smem:[#allocation20_spill]] %s1511_s2 }
   0x3   :  { %7 = vsyncpa [#allocation6], 0 }
   0x4   :  { %9 = vsyncpa [#allocation6 + $0x1], 0 }
   0x5   :  { %10 = vsyncpa [#allocation9], 0 }
   0x6   :  { %12 = vsyncpa [#allocation9 + $0x1], 0 }
   0x7   :  { %13 = vsyncpa [#allocation7], 0 }
   0x8   :  { %15 = vsyncpa [#allocation7 + $0x1], 0  ;;  %s1175_s9 = smov 0   ;;  %s1177_s10 = smov 0  }
   0x9   :  { %s1179_s11 = smov 0   ;;  %s1181_s12 = smov 0  }
   0xa   :  { %s1183_s13 = smov 0   ;;  %s1185_s14 = smov 0  }
   0xb   :  { %s1187_s15 = smov 0   ;;  %s1189_s16 = smov 0  }
   0xc   :  { %s1191_s17 = smov 0   ;;  %s1193_s18 = smov 0  }
   0xd   :  { %s1195_s19 = smov 0  }
   0xe LB: > { %1525 = sst [smem:[#allocation14_spill]] %s1118_s12  ;;  %s776_s20 = sadd.s32 4294967295, %s1146_s19   ;;  %s1146_s19 = sphi %s1195_s19, %s21_s19   ;;  %s1142_s18 = sphi %s1193_s18, %s1563_s18   ;;  %s1138_s17 = sphi %s1191_s17, %s1554_s17   ;;  %s1134_s16 = sphi %s1189_s16, %s1562_s16   ;;  %s1130_s15 = sphi %s1187_s15, %s1553_s15   ;;  %s1126_s14 = sphi %s1185_s14, %s1561_s14   ;;  %s1122_s13 = sphi %s1183_s13, %s1560_s13   ;;  %s1118_s12 = sphi %s1181_s12, %s1559_s12   ;;  %s1114_s11 = sphi %s1179_s11, %s1558_s11   ;;  %s1110_s10 = sphi %s1177_s10, %s1557_s10   ;;  %s1106_s9 = sphi %s1175_s9, %s1556_s9  }
   0xf   : > { %1526 = sst [smem:[#allocation15_spill]] %s1138_s17  ;;  %s777_s21 = sadd.s32 4294967294, %s1146_s19  }
  0x10   : > { %s51_s22 = sadd.s32 1, %s1126_s14  ;;  %p58_p0 = scmp.ne.s32.totalorder %s1126_s14, %s1122_s13 }
  0x11   : > { %p1513_p1 = scmp.eq.s32.totalorder %s1146_s19, 0  ;;  %p64_p2 = scmp.ne.s32.totalorder %s1122_s13, %s1118_s12 }
  0x12   : > { %p1238_p3 = scmp.eq.s32.totalorder %s776_s20, 0  ;;  %p124_p4 = scmp.eq.s32.totalorder %s776_s20, 3 }
  0x13   : > { %p1244_p5 = por %p1513_p1, %p58_p0  ;;  %p130_p6 = scmp.eq.s32.totalorder %s777_s21, 3 }
  0x14   : > { %p1250_p7 = por %p1238_p3, %p64_p2  ;;  %p1254_p8 = por %p124_p4, %p58_p0 }
  0x15   : > { %p1258_p9 = por %p130_p6, %p64_p2  ;;  %p1512_p10 = scmp.lt.s32.totalorder %s1146_s19, 4 }
  0x16   : > { %s1529_s25 = scalar_select %p1250_p7, 1, 0 }
  0x17   : > { %s1530_s26 = scalar_select %p1254_p8, 1, 0 }
  0x18   : > { %s1531_s27 = scalar_select %p1258_p9, 1, 0 }
  0x19   : > { %s150_s28 = sand.u32 1, %s1126_s14   ;;  %s799_s30 = sshll.u32 %s1142_s18, 8 }
  0x1a   : > { %1532 = sst [smem:[#allocation16_spill]] %s1531_s27  ;;  %s780_s29 = sshll.u32 %s150_s28, 3 }
  0x1b   : > { %s1533_s0 = sld [smem:[#allocation19_spill]]  ;;  %s154_s6 = scalar_lea.vmem [#allocation5], %s780_s29 }
  0x1c   : > { %s164_s7 = sshll.u32 %s154_s6, 4  ;;  %p1276_p11 = pnand %p1512_p10, %p1244_p5  ;;  %s1270_s7 = int_to_ptr.vmem [resolvable:$true] %s164_s7 }
  0x1d   : > { %s151_s21 = scalar_lea.sflag [#allocation6], %s150_s28 }
  0x1e   : > { %p961_p2 = pneg %p1276_p11 }
  0x21   : > { %s696_s5 = scalar_lea.hbm %s1533_s0, %s799_s30  ;;  %s964_s3 = scalar_lea.hbm %s1533_s0, 512 }
  0x22   : > { %s1268_s8 = scalar_lea.hbm %s696_s5, 128  ;;  %s989_s29 = scalar_lea.hbm %s696_s5, 256 }
  0x23   : > { %p960_p0 = scmp.ne.s32.totalorder %s1268_s8, %s989_s29  ;;  %p965_p5 = scmp.lt.u32.totalorder %s1268_s8, %s1533_s0 }
  0x24   : > { %p966_p10 = scmp.lt.u32.totalorder %s964_s3, %s989_s29  ;;  %p968_p12 = scmp.lt.u32.totalorder %s989_s29, %s1268_s8 }
  0x25   : > { %p962_p4 = pnand %p961_p2, %p960_p0 }
  0x26   : > { %p967_p1 = por %p966_p10, %p965_p5 }
  0x27   : > { %p963_p6 = pneg %p962_p4 }
  0x28   : > { %p969_p13 = por %p968_p12, %p967_p1 }
  0x2a   : > { %p970_p9 = pnand %p969_p13, %p963_p6 }
  0x2c   : > { %973 = shalt.err (!%p970_p9)
}
  0x2d   : > { %s974_s28 = scalar_lea.vmem %s1270_s7, 128  ;;  %s1148_s5 = smov [#allocation5]  }
  0x2e   : > { %p975_p0 = scmp.ne.s32.totalorder %s1270_s7, %s974_s28  ;;  %s979_s30 = sshll.u32 %s1148_s5, 4  ;;  %s980_s30 = int_to_ptr.vmem [resolvable:$false] %s979_s30 }
  0x2f   : > { %s981_s24 = scalar_lea.vmem %s980_s30, 256  ;;  %p982_p7 = scmp.lt.s32.totalorder %s1270_s7, %s980_s30 }
  0x30   : > { %p977_p4 = pnand %p975_p0, %p961_p2  ;;  %p983_p10 = scmp.lt.s32.totalorder %s981_s24, %s974_s28 }
  0x32   : > { %p978_p8 = pneg %p977_p4  ;;  %p984_p5 = por %p983_p10, %p982_p7 }
  0x34   : > { %p985_p1 = pnand %p984_p5, %p978_p8 }
  0x36   : > { %988 = shalt.err (!%p985_p1)
}
  0x37   : > { %837 = dma.hbm_to_vmem [thread:$0]  (!%p1276_p11), %s1268_s8, 128, %s1270_s7, %s151_s21  }
  0x38   : > { %p1535_p7 = scmp.lt.s32.totalorder %s1146_s19, 5  ;;  %p1536_p8 = scmp.ge.s32.totalorder %s1146_s19, 1 }
  0x39   : > { %s33_s29 = sadd.s32 1, %s1138_s17  ;;  %s40_s3 = sadd.s32 1, %s1142_s18 }
  0x3a   : > { %p1310_p9 = pnand %p1536_p8, %p1535_p7  ;;  %p34_p12 = scmp.ge.s32.totalorder %s33_s29, 2 }
  0x3b   : > { %p75_p13 = scmp.lt.s32.totalorder %s1138_s17, 1  ;;  %s85_s4 = sadd.s32 1, %s1114_s11 }
  0x3c   : > { %s1565_s29 = smov (%p34_p12, %s33_s29), 0  ;;  %s1567_s3 = smov (!%p34_p12, %s40_s3), %s1142_s18 }
  0x3d   : > { %1538 = sst [smem:[#allocation17_spill]] %s1565_s29  ;;  %p42_p11 = scmp.ge.s32.totalorder %s1567_s3, 2 }
  0x3e   : > { %s76_s7 = scalar_select %p75_p13, %s1138_s17, 1 }
  0x3f   : > { %p78_p2 = scmp.lt.s32.totalorder %s1565_s29, 1  ;;  %p92_p6 = scmp.ne.s32.totalorder %s1114_s11, %s1110_s10 }
  0x40   : > { %p98_p0 = scmp.ne.s32.totalorder %s1110_s10, %s1106_s9  ;;  %s1569_s3 = smov (%p42_p11, %s1567_s3), 0 }
  0x41   : > { %1539 = sst [smem:[#allocation18_spill]] %s1569_s3  ;;  %s46_s21 = ssub.s32 %s1142_s18, %s1569_s3 }
  0x42   : > { %s79_s8 = scalar_select %p78_p2, %s1565_s29, 1 }
  0x43   : > { %p1540_p4 = scmp.eq.s32.totalorder %s1146_s19, 0  ;;  %p49_p5 = scmp.eq.s32.totalorder %s46_s21, 0 }
  0x44   : > { %s81_s28 = ssub.s32 %s76_s7, %s79_s8  ;;  %p1340_p1 = por %p98_p0, %p1238_p3 }
  0x45   : > { %p1334_p10 = por %p92_p6, %p1540_p4  ;;  %s82_s5 = sor.u32 %s81_s28, %s46_s21 }
  0x46   : > { %s1542_s30 = scalar_select %p1340_p1, 1, 0 }
  0x47   : > { %s1347_s9 = scalar_select %p49_p5, %s1126_s14, %s51_s22  }
  0x48   : > { %p83_p7 = scmp.eq.s32.totalorder %s82_s5, 0  ;;  %s171_s24 = sand.u32 1, %s1114_s11  }
  0x49   : > { %s783_s0 = sshll.u32 %s171_s24, 3  ;;  %s784_s29 = sshll.u32 %s1142_s18, 1 }
  0x4a   : > { %s1351_s3 = scalar_select %p83_p7, %s1114_s11, %s85_s4  }
  0x4b   : > { %s183_s17 = sadd.s32 %s784_s29, %s76_s7  ;;  %s175_s27 = scalar_lea.vmem [#allocation8], %s783_s0 }
  0x4c   : > { %s187_s12 = sshll.u32 %s175_s27, 4  ;;  %s785_s2 = sshll.u32 %s183_s17, 7  ;;  %s1354_s12 = int_to_ptr.vmem [resolvable:$true] %s187_s12 }
  0x4d   : > { %s1359_s21 = scalar_lea.hbm %s1510_s1, %s785_s2  ;;  %p1543_p3 = scmp.lt.s32.totalorder %s1146_s19, 4 }
  0x4e   : > { %s172_s0 = scalar_lea.sflag [#allocation9], %s171_s24  ;;  %s990_s17 = scalar_lea.hbm %s1359_s21, 128 }
  0x4f   : > { %p1365_p8 = pnand %p1543_p3, %p1334_p10  ;;  %p991_p12 = scmp.ne.s32.totalorder %s1359_s21, %s990_s17 }
  0x50   : > { %s995_s29 = scalar_lea.hbm %s1510_s1, 512  ;;  %p996_p6 = scmp.lt.u32.totalorder %s1359_s21, %s1510_s1 }
  0x51   : > { %p992_p13 = pneg %p1365_p8  ;;  %p997_p0 = scmp.lt.u32.totalorder %s995_s29, %s990_s17 }
  0x52   : > { %p999_p10 = scmp.lt.u32.totalorder %s990_s17, %s1359_s21 }
  0x53   : > { %p993_p11 = pnand %p992_p13, %p991_p12  ;;  %p998_p4 = por %p997_p0, %p996_p6 }
  0x55   : > { %p994_p2 = pneg %p993_p11  ;;  %p1000_p5 = por %p999_p10, %p998_p4 }
  0x57   : > { %p1001_p7 = pnand %p1000_p5, %p994_p2 }
  0x59   : > { %1004 = shalt.err (!%p1001_p7)
}
  0x5a   : > { %s1005_s6 = scalar_lea.vmem %s1354_s12, 128  ;;  %s1149_s28 = smov [#allocation8]  }
  0x5b   : > { %p1006_p3 = scmp.ne.s32.totalorder %s1354_s12, %s1005_s6  ;;  %s1010_s5 = sshll.u32 %s1149_s28, 4  ;;  %s1011_s5 = int_to_ptr.vmem [resolvable:$false] %s1010_s5 }
  0x5c   : > { %s1012_s24 = scalar_lea.vmem %s1011_s5, 256  ;;  %p1013_p1 = scmp.lt.s32.totalorder %s1354_s12, %s1011_s5 }
  0x5d   : > { %p1008_p12 = pnand %p1006_p3, %p992_p13  ;;  %p1014_p6 = scmp.lt.s32.totalorder %s1012_s24, %s1005_s6 }
  0x5f   : > { %p1009_p11 = pneg %p1008_p12  ;;  %p1015_p0 = por %p1014_p6, %p1013_p1 }
  0x61   : > { %p1016_p4 = pnand %p1015_p0, %p1009_p11 }
  0x63   : > { %1019 = shalt.err (!%p1016_p4)
}
  0x64   : > { %840 = dma.hbm_to_vmem [thread:$0]  (!%p1365_p8), %s1359_s21, 128, %s1354_s12, %s172_s0  }
  0x65   : > { %196 = sbr.rel (%p1310_p9) target bundleno = 1738 (0x6ca), region = 28  ;;  %s1397_s23 = sand.u32 (!%p1310_p9), 1, %s1122_s13  }
  0x66   : > { %s787_s8 = sshll.u32 (!%p1310_p9), %s1397_s23, 3  ;;  %s199_s17 = scalar_lea.sflag (!%p1310_p9), [#allocation6], %s1397_s23 }
  0x67   : > { %s1401_s2 = scalar_lea.vmem (!%p1310_p9), [#allocation5], %s787_s8  ;;  %p1545_p1 = scmp.ne.s32.totalorder (!%p1310_p9), %s1529_s25, 0 }
  0x6c   : > { %1093 = dma.done.wait (%p1545_p1), %s199_s17, 128  }
  0x6d   : > { %1095 = vsyncadd (%p1545_p1), %s199_s17, 4294967168  ;;  %s207_s12 = sand.u32 1, %s1110_s10   ;;  %p1546_p9 = scmp.ne.s32.totalorder %s1542_s30, 0 }
  0x6e   : > { %s1408_s20 = sshll.u32 %s207_s12, 3  ;;  %s208_s21 = scalar_lea.sflag [#allocation9], %s207_s12 }
  0x6f   : > { %s211_s22 = scalar_lea.vmem [#allocation8], %s1408_s20 }
  0x70   : > { %1097 = dma.done.wait (%p1546_p9), %s208_s21, 128  }
  0x71   : > { %1099 = vsyncadd (%p1546_p9), %s208_s21, 4294967168  ;;  %s1415_s0 = scalar_lea.vmem [#allocation10], %s787_s8  ;;  %p790_p8 = scmp.ne.s32.totalorder %s1130_s15, 0 }
  0x72   : > { %vm246_vm0 = vcmask (!%p790_p8), 7168   ;;  %v1150_v0 = vmov (!%p790_p8), -inf   ;;  %v1151_v1 = vmov (!%p790_p8), 0.0  }
  0x73   : > { %245 = sbr.rel (%p790_p8) target bundleno = 122 (0x7a), region = 40  ;;  %247 = vst.msk [vmem:[#allocation2] sm:$0xff] (!%p790_p8), %vm246_vm0, %v1150_v0  ;;  %248 = vst.msk [vmem:[#allocation3] sm:$0xff] (!%p790_p8), %vm246_vm0, %v1151_v1 }
  0x74   : > { %249 = vst [vmem:[#allocation4] sm:$0xff] (!%p790_p8), %v1151_v1 }
  0x7a PF: > { %p250_p13 = scmp.le.s32.totalorder %s1130_s15, 1  ;;  %p251_p2 = scmp.eq.s32.totalorder %s1130_s15, 1 }
  0x7c   : > { %p252_p10 = pnand %p251_p2, %p250_p13 }
  0x7d   : > { %v257_v2 = vld [vmem:[%s211_s22] sm:$0xff] (!%p252_p10)  ;;  %v1152_v3 = vmov (!%p252_p10), 0.0   ;;  %vm1153_vm1 = vmmov (!%p252_p10), 0   ;;  %v256_v4 = vld [vmem:[%s1401_s2] sm:$0xff] (!%p252_p10)  ;;  %v328_v5 = vlaneseq (!%p252_p10)  ;;  %s791_s25 = sshll.u32 (!%p252_p10), %s1130_s15, 3  ;;  %vm342_vm3 = vcmask (!%p252_p10), 64512  }
  0x7e   : > { %255 = sbr.rel (%p252_p10) target bundleno = 846 (0x34e), region = 44  ;;  %808 = vmatprep.subr.mxu0 (!%p252_p10), %v1152_v3  ;;  %810 = vmatprep.mubr.msk.f32.mxu0 (!%p252_p10), %vm1153_vm1, %v1152_v3  ;;  %v337_v8 = vstv (!%p252_p10), %s791_s25  ;;  %v1154_v15 = vmov (!%p252_p10), 0   ;;  %v341_v16 = vld [vmem:[#allocation2] sm:$0xff] (!%p252_p10)  ;;  %vm364_vm4 = vcmask (!%p252_p10), 7168   ;;  %v358_v27 = vld [vmem:[#allocation3] sm:$0xff] (!%p252_p10)  ;;  %v366_v31 = vld [vmem:[#allocation4] sm:$0xff] (!%p252_p10) }
  0x7f   : > { %809 = vmatpush3.xpose.msra.mxu0 (!%p252_p10), %v257_v2  ;;  %813 = vmatprep.subr.mxu1 (!%p252_p10), %v1152_v3  ;;  %v329_v6 = vshrl.u32 (!%p252_p10), %v328_v5, 7  ;;  %v335_v7 = vand.u32 (!%p252_p10), 127, %v328_v5 }
  0x80   : > { %814 = vmatpush3.msra.mxu1 (!%p252_p10), %v257_v2  ;;  %815 = vmatprep.mubr.msk.f32.mxu1 (!%p252_p10), %vm1153_vm1, %v1152_v3 }
  0x81   : > { %v333_v9 = vadd.s32 (!%p252_p10), 8, %v329_v6  ;;  %v338_v10 = vadd.s32 (!%p252_p10), %v337_v8, %v335_v7  ;;  %944 = vset.pattern.permute.xlu0 (!%p252_p10), %v1154_v15  ;;  %945 = vset.pattern.permute.xlu1 (!%p252_p10), %v1154_v15 }
  0x82   : > { %811 = vmatmul.mubr.f32.vlgmr.msra.gmra.mrb[0].mxu0 (!%p252_p10), %v256_v4 }
  0x83   : > { %vm339_vm2 = vcmp.gt.s32.totalorder (!%p252_p10), %v338_v10, %v333_v9 }
 0x155   : > { %v324_v11 = vpop.f32.mrb[0].mxu0 }
 0x156   : > { %v340_v12 = vsel %vm339_vm2, -1000000.0, %v324_v11  ;;  %v812_v13 = vpop.f32.mrb[1].mxu0 }
 0x157   : > { %v343_v14 = vsel %vm342_vm3, %v340_v12, -inf }
 0x158   : > { %344 = vmax.xlane.f32.xlu0 %v343_v14 }
 0x1e5   : > { %v345_v17 = vpop.xlane.xlu0 %344 }
 0x1e6   : > { %v346_v18 = vmax.f32 %v341_v16, %v345_v17 }
 0x1e8   : > { %v347_v19 = vsub.f32 %v341_v16, %v346_v18  ;;  %448 = vst.msk [vmem:[#allocation2] sm:$0xff] %vm364_vm4, %v346_v18  ;;  %352 = vperm.xlu0 %944, %v346_v18  }
 0x1ea   : > { %v348_v25 = vmul.f32 1.442695, %v347_v19 }
 0x267   : > { %v353_v20 = vpop.permute.xlu0 %352 }
 0x268   : > { %v355_v21 = vsub.f32 %v340_v12, %v353_v20 }
 0x26a   : > { %v356_v22 = vmul.f32 1.442695, %v355_v21 }
 0x26c   : > { %946 = vpow2.f32 %v356_v22 }
 0x26d   : > { %948 = vpow2.f32 %v348_v25 }
 0x276   : > { %v947_v23 = vpop.eup %946 }
 0x277   : > { %816 = vmatmul.mubr.msk.f32.vlgmr.msra.gmra.mrb[0].mxu1 %vm342_vm3, %v947_v23  ;;  %v360_v24 = vsel %vm342_vm3, %v947_v23, 0.0  ;;  %v949_v26 = vpop.eup %948 }
 0x278   : > { %361 = vadd.xlane.f32.xlu1 %v360_v24  ;;  %v359_v28 = vmul.f32 %v949_v26, %v358_v27 }
 0x289   : > { %369 = vperm.xlu1 %945, %v949_v26  }
 0x305   : > { %v362_v29 = vpop.xlane.xlu1 %361 }
 0x306   : > { %v363_v30 = vadd.f32 %v362_v29, %v359_v28 }
 0x308   : > { %365 = vst.msk [vmem:[#allocation3] sm:$0xff] %vm364_vm4, %v363_v30 }
 0x309   : > { %v370_v32 = vpop.permute.xlu1 %369 }
 0x30a   : > { %v372_v33 = vmul.f32 %v370_v32, %v366_v31 }
 0x34a   : > { %v442_v34 = vpop.f32.mrb[0].mxu1 }
 0x34b   : > { %v446_v35 = vadd.f32 %v442_v34, %v372_v33  ;;  %v817_v36 = vpop.f32.mrb[1].mxu1 }
 0x34d   : > { %447 = vst [vmem:[#allocation4] sm:$0xff] %v446_v35 }
 0x34e PF: > { %p449_p5 = scmp.ne.s32.totalorder %s1130_s15, 1 }
 0x350   : > { %p450_p7 = pnand %p449_p5, %p250_p13 }
 0x351   : > { %v455_v37 = vld [vmem:[%s211_s22] sm:$0xff] (!%p450_p7)  ;;  %v1155_v38 = vmov (!%p450_p7), 0.0   ;;  %vm1156_vm5 = vmmov (!%p450_p7), 0   ;;  %v454_v39 = vld [vmem:[%s1401_s2] sm:$0xff] (!%p450_p7)  ;;  %vm527_vm6 = vcmask (!%p450_p7), 64512   ;;  %v1157_v43 = vmov (!%p450_p7), 0  }
 0x352   : > { %453 = sbr.rel (%p450_p7) target bundleno = 1569 (0x621), region = 48  ;;  %818 = vmatprep.subr.mxu0 (!%p450_p7), %v1155_v38  ;;  %820 = vmatprep.mubr.msk.f32.mxu0 (!%p450_p7), %vm1156_vm5, %v1155_v38  ;;  %v526_v44 = vld [vmem:[#allocation2] sm:$0xff] (!%p450_p7)  ;;  %vm549_vm7 = vcmask (!%p450_p7), 7168   ;;  %v543_v55 = vld [vmem:[#allocation3] sm:$0xff] (!%p450_p7) }
 0x353   : > { %819 = vmatpush3.xpose.msra.mxu0 (!%p450_p7), %v455_v37  ;;  %823 = vmatprep.subr.mxu1 (!%p450_p7), %v1155_v38 }
 0x354   : > { %824 = vmatpush3.msra.mxu1 (!%p450_p7), %v455_v37  ;;  %825 = vmatprep.mubr.msk.f32.mxu1 (!%p450_p7), %vm1156_vm5, %v1155_v38  ;;  %v551_v59 = vld [vmem:[#allocation4] sm:$0xff] (!%p450_p7) }
 0x355   : > { %950 = vset.pattern.permute.xlu0 (!%p450_p7), %v1157_v43  ;;  %951 = vset.pattern.permute.xlu1 (!%p450_p7), %v1157_v43 }
 0x356   : > { %821 = vmatmul.mubr.f32.vlgmr.msra.gmra.mrb[0].mxu0 (!%p450_p7), %v454_v39 }
 0x429   : > { %v522_v40 = vpop.f32.mrb[0].mxu0 }
 0x42a   : > { %v822_v41 = vpop.f32.mrb[1].mxu0  ;;  %v528_v42 = vsel %vm527_vm6, %v522_v40, -inf }
 0x42b   : > { %529 = vmax.xlane.f32.xlu0 %v528_v42 }
 0x4b8   : > { %v530_v45 = vpop.xlane.xlu0 %529 }
 0x4b9   : > { %v531_v46 = vmax.f32 %v526_v44, %v530_v45 }
 0x4bb   : > { %v532_v47 = vsub.f32 %v526_v44, %v531_v46  ;;  %633 = vst.msk [vmem:[#allocation2] sm:$0xff] %vm549_vm7, %v531_v46  ;;  %537 = vperm.xlu0 %950, %v531_v46  }
 0x4bd   : > { %v533_v53 = vmul.f32 1.442695, %v532_v47 }
 0x53a   : > { %v538_v48 = vpop.permute.xlu0 %537 }
 0x53b   : > { %v540_v49 = vsub.f32 %v522_v40, %v538_v48 }
 0x53d   : > { %v541_v50 = vmul.f32 1.442695, %v540_v49 }
 0x53f   : > { %952 = vpow2.f32 %v541_v50 }
 0x540   : > { %954 = vpow2.f32 %v533_v53 }
 0x549   : > { %v953_v51 = vpop.eup %952 }
 0x54a   : > { %826 = vmatmul.mubr.msk.f32.vlgmr.msra.gmra.mrb[0].mxu1 %vm527_vm6, %v953_v51  ;;  %v545_v52 = vsel %vm527_vm6, %v953_v51, 0.0  ;;  %v955_v54 = vpop.eup %954 }
 0x54b   : > { %546 = vadd.xlane.f32.xlu1 %v545_v52  ;;  %v544_v56 = vmul.f32 %v955_v54, %v543_v55 }
 0x55c   : > { %554 = vperm.xlu1 %951, %v955_v54  }
 0x5d8   : > { %v547_v57 = vpop.xlane.xlu1 %546 }
 0x5d9   : > { %v548_v58 = vadd.f32 %v547_v57, %v544_v56 }
 0x5db   : > { %550 = vst.msk [vmem:[#allocation3] sm:$0xff] %vm549_vm7, %v548_v58 }
 0x5dc   : > { %v555_v60 = vpop.permute.xlu1 %554 }
 0x5dd   : > { %v557_v61 = vmul.f32 %v555_v60, %v551_v59 }
 0x61d   : > { %v627_v62 = vpop.f32.mrb[0].mxu1 }
 0x61e   : > { %v631_v63 = vadd.f32 %v627_v62, %v557_v61  ;;  %v827_v0 = vpop.f32.mrb[1].mxu1 }
 0x620   : > { %632 = vst [vmem:[#allocation4] sm:$0xff] %v631_v63 }
 0x621 PF: > { %637 = sbr.rel (%p449_p5) target bundleno = 1712 (0x6b0), region = 52  ;;  %v638_v1 = vld [vmem:[#allocation3] sm:$0xff] (!%p449_p5)  ;;  %v1158_v2 = vmov (!%p449_p5), 0  }
 0x622   : > { %956 = vset.pattern.permute.xlu0 (!%p449_p5), %v1158_v2  ;;  %957 = vrcp.f32 (!%p449_p5), %v638_v1 }
 0x627   : > { %v640_v4 = vld [vmem:[#allocation4] sm:$0xff] (!%p449_p5) }
 0x62c   : > { %v958_v3 = vpop.eup %957 }
 0x62d   : > { %643 = vperm.xlu0 %956, %v958_v3  }
 0x6ac   : > { %v644_v5 = vpop.permute.xlu0 %643 }
 0x6ad   : > { %v646_v6 = vmul.f32 %v644_v5, %v640_v4 }
 0x6af   : > { %647 = vst [vmem:[%s1415_s0] sm:$0xff] %v646_v6 }
 0x6b0 PF: > { %s796_s30 = sshll.u32 %s1134_s16, 7  ;;  %s1547_s29 = sld [smem:[#allocation20_spill]] }
 0x6b1   : > { %s663_s7 = sshll.u32 %s1415_s0, 4  ;;  %s649_s6 = scalar_lea.sflag [#allocation7], %s1397_s23  ;;  %s664_s7 = int_to_ptr.vmem [resolvable:$true] %s663_s7 }
 0x6b2   : > { %s1020_s28 = scalar_lea.vmem %s664_s7, 128  ;;  %p1548_p12 = scmp.ne.s32.totalorder %s1530_s26, 0 }
 0x6b3   : > { %p1021_p3 = scmp.ne.s32.totalorder %s664_s7, %s1020_s28  ;;  %s1159_s5 = smov [#allocation10]  }
 0x6b4   : > { %s1024_s24 = sshll.u32 %s1159_s5, 4  ;;  %s1025_s24 = int_to_ptr.vmem [resolvable:$false] %s1024_s24 }
 0x6b5   : > { %p1022_p11 = pnand %p1021_p3, %p1548_p12  ;;  %s1026_s8 = scalar_lea.vmem %s1025_s24, 256 }
 0x6b6   : > { %s1451_s4 = scalar_lea.hbm %s1547_s29, %s796_s30  ;;  %p1027_p0 = scmp.lt.s32.totalorder %s664_s7, %s1025_s24 }
 0x6b7   : > { %p1023_p6 = pneg %p1022_p11  ;;  %p1028_p4 = scmp.lt.s32.totalorder %s1026_s8, %s1020_s28 }
 0x6b9   : > { %p1029_p1 = por %p1028_p4, %p1027_p0 }
 0x6bb   : > { %p1030_p9 = pnand %p1029_p1, %p1023_p6 }
 0x6bd   : > { %1033 = shalt.err (!%p1030_p9)
}
 0x6be   : > { %s1034_s16 = scalar_lea.hbm %s1451_s4, 128  ;;  %s1038_s2 = scalar_lea.hbm %s1547_s29, 256 }
 0x6bf   : > { %p1035_p8 = scmp.ne.s32.totalorder %s1451_s4, %s1034_s16  ;;  %p1039_p10 = scmp.lt.u32.totalorder %s1451_s4, %s1547_s29 }
 0x6c0   : > { %p1040_p5 = scmp.lt.u32.totalorder %s1038_s2, %s1034_s16  ;;  %p1042_p3 = scmp.lt.u32.totalorder %s1034_s16, %s1451_s4 }
 0x6c1   : > { %p1036_p13 = pnand %p1035_p8, %p1548_p12 }
 0x6c2   : > { %p1041_p7 = por %p1040_p5, %p1039_p10 }
 0x6c3   : > { %p1037_p2 = pneg %p1036_p13 }
 0x6c4   : > { %p1043_p11 = por %p1042_p3, %p1041_p7 }
 0x6c6   : > { %p1044_p6 = pnand %p1043_p11, %p1037_p2 }
 0x6c8   : > { %1047 = shalt.err (!%p1044_p6)
}
 0x6c9   : > { %832 = dma.vmem_to_hbm [thread:$0]  (%p1548_p12), %s664_s7, 128, %s1451_s4, %s649_s6  }
 0x6ca PF: > { %s1549_s21 = sld [smem:[#allocation14_spill]]  ;;  %s1550_s22 = sld [smem:[#allocation16_spill]] }
 0x6cb   : > { %p846_p0 = scmp.ge.s32.totalorder %s1146_s19, 2 }
 0x6d0   : > { %s675_s0 = sand.u32 1, %s1549_s21   ;;  %p1551_p4 = scmp.ne.s32.totalorder %s1550_s22, 0 }
 0x6d1   : > { %s676_s25 = scalar_lea.sflag [#allocation7], %s675_s0 }
 0x6d2   : > { %p842_p1 = pnand %p846_p0, %p1551_p4 }
 0x6d4   : > { %1101 = dma.done.wait (!%p842_p1), %s676_s25, 128  }
 0x6d5   : > { %1103 = vsyncadd (!%p842_p1), %s676_s25, 4294967168  ;;  %s21_s19 = sadd.s32 1, %s1146_s19   ;;  %s1552_s26 = smov %s1347_s9 }
 0x6d6   : > { %p18_p9 = scmp.ge.s32.totalorder %s21_s19, 6   ;;  %s1553_s15 = sld [smem:[#allocation15_spill]] }
 0x6d7   : > { %s1554_s17 = sld [smem:[#allocation17_spill]]  ;;  %s1555_s30 = sld [smem:[#allocation18_spill]] }
 0x6d8   : > { %s1556_s9 = smov %s1110_s10  ;;  %s1557_s10 = smov %s1114_s11 }
 0x6d9   : > { %s1558_s11 = smov %s1351_s3  ;;  %s1559_s12 = smov %s1122_s13 }
 0x6da   : > { %s1560_s13 = smov %s1126_s14  ;;  %s1561_s14 = smov %s1552_s26 }
 0x6db   : > { %s1562_s16 = smov %s1142_s18  ;;  %20 = sbr.rel (!%p18_p9) target bundleno = 14 (0xe), region = 102 }
 0x6dd   : > { %s1563_s18 = smov %s1555_s30 }
 0x6e2   :  { %681 = vsyncpa [#allocation6], 1 }
 0x6e3   :  { %683 = vsyncpa [#allocation6 + $0x1], 1 }
 0x6e4   :  { %684 = vsyncpa [#allocation9], 1 }
 0x6e5   :  { %686 = vsyncpa [#allocation9 + $0x1], 1 }
 0x6e6   :  { %687 = vsyncpa [#allocation7], 1 }
 0x6e7   :  { %689 = vsyncpa [#allocation7 + $0x1], 1 }

</bundles_post_ra>
